<compile_context>
chip_gen: v5e
topology: v5e:2x2
jax: 0.10.0
libtpu: 0.0.40
codegen_flags: <defaults>
</compile_context>

<pallas_src>
import functools

import jax
import jax.numpy as jnp
from jax import lax
from jax.experimental import pallas as pl
from jax.experimental.pallas import tpu as pltpu

TEMPERATURE = 0.1
SCALE_BY_TEMPERATURE = True


def _supcon_kernel(feat_q_ref, lbl_q_ref, feat_k_ref, lbl_k_ref,
                   loss_ref, valid_ref, *, temperature, scale_by_temperature):
    inv_t = 1.0 / temperature

    fq = feat_q_ref[...].astype(jnp.float32)   # (TQ, D) anchor rows
    fk = feat_k_ref[...].astype(jnp.float32)   # (B,  D) all rows (resident)
    lq = lbl_q_ref[...]                        # (TQ, 1) labels (column)
    lk = lbl_k_ref[...]                        # (1,  B) labels (lane-dense row)

    tq = fq.shape[0]
    nk = fk.shape[0]

    # F.normalize(features, p=2, dim=1) with torch's eps=1e-12:
    #   x / max(||x||, eps)  ==  x * rsqrt(max(||x||^2, eps^2))
    inv_nq = lax.rsqrt(jnp.maximum(jnp.sum(fq * fq, axis=1, keepdims=True), 1e-24))
    inv_nk = lax.rsqrt(jnp.maximum(jnp.sum(fk * fk, axis=1, keepdims=True), 1e-24))
    fqn = (fq * inv_nq).astype(jnp.bfloat16)   # bf16 MXU inputs, f32 accumulate
    fkn = (fk * inv_nk).astype(jnp.bfloat16)

    # sim[i, j] = <q_i, k_j> / T ; contract dim 1 with dim 1 (no explicit .T)
    sim = lax.dot_general(
        fqn, fkn, dimension_numbers=(((1,), (1,)), ((), ())),
        preferred_element_type=jnp.float32) * inv_t          # (TQ, B)

    # Label-equality (positives) and self-column exclusion via iota compare.
    same_label = lq == lk                                    # (TQ, B) bool
    q_row = pl.program_id(0) * tq + lax.broadcasted_iota(jnp.int32, (tq, nk), 0)
    k_col = lax.broadcasted_iota(jnp.int32, (tq, nk), 1)
    is_self = q_row == k_col
    positives = jnp.logical_and(same_label, jnp.logical_not(is_self))

    # Numerically stable log-softmax; max is taken over the full row including
    # the self column, matching the torch reference.
    logits_max = jnp.max(sim, axis=1, keepdims=True)
    logits = sim - logits_max
    exp_logits = jnp.exp(logits)
    # denominator = sum over all j != i (negatives + positives), no mask tensors
    denom = jnp.sum(jnp.where(is_self, 0.0, exp_logits), axis=1, keepdims=True)
    log_denom = jnp.log(denom)

    pos_f = positives.astype(jnp.float32)
    num_pos = jnp.sum(pos_f, axis=1, keepdims=True)          # (TQ, 1)
    pos_logit_sum = jnp.sum(jnp.where(positives, logits, 0.0),
                            axis=1, keepdims=True)
    # sum_{j in pos}(logits_ij - log_denom_i) = pos_logit_sum - num_pos*log_denom
    row_sum = pos_logit_sum - num_pos * log_denom

    valid = num_pos > 0.0
    # Exact divide: only (TQ, 1) elements, negligible cost, keeps parity with
    # the torch reference (approx reciprocal is not worth the accuracy risk here).
    loss_rows = -(row_sum / jnp.where(valid, num_pos, 1.0))
    if scale_by_temperature:
        loss_rows = loss_rows * temperature

    # TODO(synk): torch raises ValueError on NaN in log_probs; there is no
    #             in-kernel exception equivalent, so that check is omitted.
    loss_ref[...] = jnp.where(valid, loss_rows, 0.0)
    valid_ref[...] = valid.astype(jnp.float32)


def _pick_block_q(batch, max_block=256):
    """Largest multiple-of-8 divisor of `batch` <= max_block, else full batch."""
    cands = [t for t in range(8, min(max_block, batch) + 1, 8) if batch % t == 0]
    return max(cands) if cands else batch


def supcon_loss(features, labels, *, temperature=TEMPERATURE,
                scale_by_temperature=SCALE_BY_TEMPERATURE, block_q=256):
    """features: (B, D) float (any dtype); labels: (B,). Returns scalar f32 loss."""
    B, D = features.shape
    if jnp.issubdtype(labels.dtype, jnp.integer):
        labels = labels.astype(jnp.int32)      # exact integer comparison
    else:
        labels = labels.astype(jnp.float32)
    lbl_col = labels.reshape(B, 1)
    lbl_row = labels.reshape(1, B)

    tq = _pick_block_q(B, block_q)
    grid = (B // tq,)

    kernel = functools.partial(_supcon_kernel, temperature=temperature,
                               scale_by_temperature=scale_by_temperature)

    loss_rows, valid = pl.pallas_call(
        kernel,
        out_shape=(jax.ShapeDtypeStruct((B, 1), jnp.float32),
                   jax.ShapeDtypeStruct((B, 1), jnp.float32)),
        grid=grid,
        in_specs=[
            pl.BlockSpec((tq, D), lambda i: (i, 0)),   # anchor (query) rows
            pl.BlockSpec((tq, 1), lambda i: (i, 0)),   # anchor labels (column)
            pl.BlockSpec((B, D), lambda i: (0, 0)),    # keys (resident across grid)
            pl.BlockSpec((1, B), lambda i: (0, 0)),    # key labels (lane-dense row)
        ],
        out_specs=(
            pl.BlockSpec((tq, 1), lambda i: (i, 0)),
            pl.BlockSpec((tq, 1), lambda i: (i, 0)),
        ),
        compiler_params=pltpu.CompilerParams(
            dimension_semantics=("parallel",),
            vmem_limit_bytes=48 * 1024 * 1024,
        ),
    )(features, lbl_col, features, lbl_row)

    # Mean over anchors that have at least one positive (NaN if none, like torch).
    return jnp.sum(loss_rows) / jnp.sum(valid)


if __name__ == "__main__":
    key = jax.random.PRNGKey(0)
    k_feat, k_lbl = jax.random.split(key)

    B, D = 8, 32
    features = jax.random.normal(k_feat, (B, D), dtype=jnp.float32)
    labels = jax.random.randint(k_lbl, (B,), 0, 3, dtype=jnp.int32)

    loss = supcon_loss(features, labels)
    jax.block_until_ready(loss)
    print("KERNEL_OK")
</pallas_src>

<mosaic_0001>
module attributes {stable_mosaic.version = 11 : i64} {
  func.func @_supcon_kernel(%arg0: i32, %arg1: memref<8x32xf32, #tpu.memory_space<vmem>>, %arg2: memref<8x1xi32, #tpu.memory_space<vmem>>, %arg3: memref<8x32xf32, #tpu.memory_space<vmem>>, %arg4: memref<1x8xi32, #tpu.memory_space<vmem>>, %arg5: memref<8x1xf32, #tpu.memory_space<vmem>>, %arg6: memref<8x1xf32, #tpu.memory_space<vmem>>) attributes {dimension_semantics = [#tpu.dimension_semantics<parallel>], iteration_bounds = array<i64: 1>, scalar_prefetch = 0 : i64, scratch_operands = 0 : i64, tpu.core_type = #tpu.core_type<tc>, window_params = [{transform_indices = @transform_0, window_bounds = array<i64: 8, 32>}, {transform_indices = @transform_1, window_bounds = array<i64: 8, 1>}, {pipeline_mode = #tpu.pipeline_mode<synchronous>, transform_indices = @transform_2, window_bounds = array<i64: 8, 32>}, {pipeline_mode = #tpu.pipeline_mode<synchronous>, transform_indices = @transform_3, window_bounds = array<i64: 1, 8>}, {transform_indices = @transform_4, window_bounds = array<i64: 8, 1>}, {transform_indices = @transform_5, window_bounds = array<i64: 8, 1>}]} {
    %c0 = arith.constant 0 : index
    %c0_0 = arith.constant 0 : index
    %0 = vector.load %arg1[%c0, %c0_0] : memref<8x32xf32, #tpu.memory_space<vmem>>, vector<8x32xf32>
    %c0_1 = arith.constant 0 : index
    %c0_2 = arith.constant 0 : index
    %1 = vector.load %arg3[%c0_1, %c0_2] : memref<8x32xf32, #tpu.memory_space<vmem>>, vector<8x32xf32>
    %c0_3 = arith.constant 0 : index
    %c0_4 = arith.constant 0 : index
    %2 = vector.load %arg2[%c0_3, %c0_4] : memref<8x1xi32, #tpu.memory_space<vmem>>, vector<8x1xi32>
    %c0_5 = arith.constant 0 : index
    %c0_6 = arith.constant 0 : index
    %3 = vector.load %arg4[%c0_5, %c0_6] : memref<1x8xi32, #tpu.memory_space<vmem>>, vector<1x8xi32>
    %4 = arith.mulf %0, %0 : vector<8x32xf32>
    %cst = arith.constant dense<0.000000e+00> : vector<8xf32>
    %5 = vector.multi_reduction <add>, %4, %cst [1] : vector<8x32xf32> to vector<8xf32>
    %6 = vector.shape_cast %5 : vector<8xf32> to vector<8x1xf32>
    %cst_7 = arith.constant 1.000000e-24 : f32
    %7 = vector.broadcast %cst_7 : f32 to vector<8x1xf32>
    %8 = arith.maximumf %6, %7 : vector<8x1xf32>
    %9 = math.rsqrt %8 : vector<8x1xf32>
    %10 = arith.mulf %1, %1 : vector<8x32xf32>
    %cst_8 = arith.constant dense<0.000000e+00> : vector<8xf32>
    %11 = vector.multi_reduction <add>, %10, %cst_8 [1] : vector<8x32xf32> to vector<8xf32>
    %12 = vector.shape_cast %11 : vector<8xf32> to vector<8x1xf32>
    %cst_9 = arith.constant 1.000000e-24 : f32
    %13 = vector.broadcast %cst_9 : f32 to vector<8x1xf32>
    %14 = arith.maximumf %12, %13 : vector<8x1xf32>
    %15 = math.rsqrt %14 : vector<8x1xf32>
    %16 = vector.broadcast %9 : vector<8x1xf32> to vector<8x32xf32>
    %17 = arith.mulf %0, %16 : vector<8x32xf32>
    %18 = arith.truncf %17 : vector<8x32xf32> to vector<8x32xbf16>
    %19 = vector.broadcast %15 : vector<8x1xf32> to vector<8x32xf32>
    %20 = arith.mulf %1, %19 : vector<8x32xf32>
    %21 = arith.truncf %20 : vector<8x32xf32> to vector<8x32xbf16>
    %cst_10 = arith.constant dense<0.000000e+00> : vector<8x8xf32>
    %22 = tpu.matmul %18, %21, %cst_10 {dimension_numbers = #tpu.dot_dimension_numbers<[1], [1], [0], [0], [0, 0, 1, 0], [], []>} : vector<8x32xbf16>, vector<8x32xbf16>, vector<8x8xf32> -> vector<8x8xf32>
    %cst_11 = arith.constant 1.000000e+01 : f32
    %23 = vector.broadcast %cst_11 : f32 to vector<8x8xf32>
    %24 = arith.mulf %22, %23 : vector<8x8xf32>
    %25 = vector.broadcast %2 : vector<8x1xi32> to vector<8x8xi32>
    %26 = vector.broadcast %3 : vector<1x8xi32> to vector<8x8xi32>
    %27 = arith.cmpi eq, %25, %26 : vector<8x8xi32>
    %c8_i32 = arith.constant 8 : i32
    %28 = arith.muli %arg0, %c8_i32 : i32
    %29 = tpu.iota {dimensions = array<i32: 0>} : vector<8x8xi32>
    %30 = vector.broadcast %28 : i32 to vector<8x8xi32>
    %31 = arith.addi %30, %29 : vector<8x8xi32>
    %32 = tpu.iota {dimensions = array<i32: 1>} : vector<8x8xi32>
    %33 = arith.cmpi eq, %31, %32 : vector<8x8xi32>
    %cst_12 = arith.constant dense<true> : vector<8x8xi1>
    %34 = arith.xori %33, %cst_12 : vector<8x8xi1>
    %35 = arith.andi %27, %34 : vector<8x8xi1>
    %cst_13 = arith.constant dense<0xFF800000> : vector<8xf32>
    %36 = vector.multi_reduction <maximumf>, %24, %cst_13 [1] : vector<8x8xf32> to vector<8xf32>
    %37 = vector.shape_cast %36 : vector<8xf32> to vector<8x1xf32>
    %38 = vector.broadcast %37 : vector<8x1xf32> to vector<8x8xf32>
    %39 = arith.subf %24, %38 : vector<8x8xf32>
    %40 = math.exp %39 : vector<8x8xf32>
    %cst_14 = arith.constant 0.000000e+00 : f32
    %41 = vector.broadcast %cst_14 : f32 to vector<8x8xf32>
    %42 = arith.select %33, %41, %40 : vector<8x8xi1>, vector<8x8xf32>
    %cst_15 = arith.constant dense<0.000000e+00> : vector<8xf32>
    %43 = vector.multi_reduction <add>, %42, %cst_15 [1] : vector<8x8xf32> to vector<8xf32>
    %44 = vector.shape_cast %43 : vector<8xf32> to vector<8x1xf32>
    %45 = math.log %44 : vector<8x1xf32>
    %46 = arith.extui %35 : vector<8x8xi1> to vector<8x8xi32>
    %47 = arith.sitofp %46 : vector<8x8xi32> to vector<8x8xf32>
    %cst_16 = arith.constant dense<0.000000e+00> : vector<8xf32>
    %48 = vector.multi_reduction <add>, %47, %cst_16 [1] : vector<8x8xf32> to vector<8xf32>
    %49 = vector.shape_cast %48 : vector<8xf32> to vector<8x1xf32>
    %cst_17 = arith.constant 0.000000e+00 : f32
    %50 = vector.broadcast %cst_17 : f32 to vector<8x8xf32>
    %51 = arith.select %35, %39, %50 : vector<8x8xi1>, vector<8x8xf32>
    %cst_18 = arith.constant dense<0.000000e+00> : vector<8xf32>
    %52 = vector.multi_reduction <add>, %51, %cst_18 [1] : vector<8x8xf32> to vector<8xf32>
    %53 = vector.shape_cast %52 : vector<8xf32> to vector<8x1xf32>
    %54 = arith.mulf %49, %45 : vector<8x1xf32>
    %55 = arith.subf %53, %54 : vector<8x1xf32>
    %cst_19 = arith.constant 0.000000e+00 : f32
    %56 = vector.broadcast %cst_19 : f32 to vector<8x1xf32>
    %57 = arith.cmpf ogt, %49, %56 : vector<8x1xf32>
    %cst_20 = arith.constant 1.000000e+00 : f32
    %58 = vector.broadcast %cst_20 : f32 to vector<8x1xf32>
    %59 = arith.select %57, %49, %58 : vector<8x1xi1>, vector<8x1xf32>
    %60 = arith.divf %55, %59 : vector<8x1xf32>
    %cst_21 = arith.constant 0.000000e+00 : f32
    %61 = vector.broadcast %cst_21 : f32 to vector<8x1xf32>
    %62 = arith.subf %61, %60 : vector<8x1xf32>
    %cst_22 = arith.constant 1.000000e-01 : f32
    %63 = vector.broadcast %cst_22 : f32 to vector<8x1xf32>
    %64 = arith.mulf %62, %63 : vector<8x1xf32>
    %cst_23 = arith.constant 0.000000e+00 : f32
    %65 = vector.broadcast %cst_23 : f32 to vector<8x1xf32>
    %66 = arith.select %57, %64, %65 : vector<8x1xi1>, vector<8x1xf32>
    %c0_24 = arith.constant 0 : index
    %c0_25 = arith.constant 0 : index
    %67 = vector.load %arg5[%c0_24, %c0_25] : memref<8x1xf32, #tpu.memory_space<vmem>>, vector<8x1xf32>
    tpu.vector_store %arg5[%c0_24, %c0_25], %66 {strides = array<i32>} : memref<8x1xf32, #tpu.memory_space<vmem>>, vector<8x1xf32>,
    %68 = arith.extui %57 : vector<8x1xi1> to vector<8x1xi32>
    %69 = arith.sitofp %68 : vector<8x1xi32> to vector<8x1xf32>
    %c0_26 = arith.constant 0 : index
    %c0_27 = arith.constant 0 : index
    %70 = vector.load %arg6[%c0_26, %c0_27] : memref<8x1xf32, #tpu.memory_space<vmem>>, vector<8x1xf32>
    tpu.vector_store %arg6[%c0_26, %c0_27], %69 {strides = array<i32>} : memref<8x1xf32, #tpu.memory_space<vmem>>, vector<8x1xf32>,
    return
  }
  func.func @transform_0(%arg0: i32) -> (i32, i32) {
    %c0_i32 = arith.constant 0 : i32
    %c0_i32_0 = arith.constant 0 : i32
    return %arg0, %c0_i32 : i32, i32
  }
  func.func @transform_1(%arg0: i32) -> (i32, i32) {
    %c0_i32 = arith.constant 0 : i32
    %c0_i32_0 = arith.constant 0 : i32
    return %arg0, %c0_i32 : i32, i32
  }
  func.func @transform_2(%arg0: i32) -> (i32, i32) {
    %c0_i32 = arith.constant 0 : i32
    %c0_i32_0 = arith.constant 0 : i32
    %c0_i32_1 = arith.constant 0 : i32
    return %c0_i32, %c0_i32_0 : i32, i32
  }
  func.func @transform_3(%arg0: i32) -> (i32, i32) {
    %c0_i32 = arith.constant 0 : i32
    %c0_i32_0 = arith.constant 0 : i32
    %c0_i32_1 = arith.constant 0 : i32
    return %c0_i32, %c0_i32_0 : i32, i32
  }
  func.func @transform_4(%arg0: i32) -> (i32, i32) {
    %c0_i32 = arith.constant 0 : i32
    %c0_i32_0 = arith.constant 0 : i32
    return %arg0, %c0_i32 : i32, i32
  }
  func.func @transform_5(%arg0: i32) -> (i32, i32) {
    %c0_i32 = arith.constant 0 : i32
    %c0_i32_0 = arith.constant 0 : i32
    return %arg0, %c0_i32 : i32, i32
  }
}

</mosaic_0001>

<bundles_post_ra>
// kernel: tpu_custom_call.1
= control target key start
LH: loop header
LB: loop body
LE: loop exit
PB: predicated region body
PF: predicated region fallthrough
CT: control target
= control target key end

     0   :  { %11 = vsyncpa [#allocation3], 0  ;;  %s212_s21 = smov [#allocation2]   ;;  %s277_s0 = inlined_call_operand.vmem [shape: f32[8,32], index: 0, kind: input, shape index: {}]   ;;  %s278_s1 = inlined_call_operand.vmem [shape: s32[8,1], index: 1, kind: input, shape index: {}]   ;;  %s279_s2 = inlined_call_operand.hbm [shape: f32[8,32], index: 2, kind: input, shape index: {}]   ;;  %s280_s3 = inlined_call_operand.vmem [shape: s32[1,8], index: 3, kind: input, shape index: {}]   ;;  %s281_s4 = inlined_call_operand.vmem [shape: f32[8,1], index: 4, kind: output, shape index: {0}]   ;;  %s282_s5 = inlined_call_operand.vmem [shape: f32[8,1], index: 5, kind: output, shape index: {1}]  }
   0x1   :  { %s21_s20 = sshll.u32 %s279_s2, 4  ;;  %s23_s22 = sshll.u32 %s212_s21, 4  ;;  %s22_s20 = int_to_ptr.hbm [resolvable:$true] %s21_s20  ;;  %s24_s22 = int_to_ptr.vmem [resolvable:$true] %s23_s22 }
   0x2   :  { %26 = dma.hbm_to_vmem [thread:$0]  %s22_s20, 128, %s24_s22, [#allocation3]  }
   0x3   :  { %210 = dma.done.wait [#allocation3], 128  }
   0x4   :  { %211 = vsyncadd [#allocation3], 4294967168  ;;  %v35_v0 = vld [vmem:[#allocation2] sm:$0xff]  ;;  %vm39_vm0 = vcmask 261120   ;;  %v213_v29 = vmov 0   ;;  %vm108_vm7 = vcmask 64512   ;;  %v99_v36 = vlaneseq }
   0x5   :  { %v54_v1 = vmul.f32 %v35_v0, %v35_v0  ;;  %v34_v2 = vld [vmem:[%s277_s0] sm:$0xff]  ;;  %173 = vset.pattern.permute.xlu1 %v213_v29  ;;  %174 = vset.pattern.permute.xlu0 %v213_v29  ;;  %vm214_vm9 = vmmov 1   ;;  %v215_v44 = vmov 0.0   ;;  %vm152_vm13 = vcmask 7168  }
   0x6   :  { %v38_v4 = vmul.f32 %v34_v2, %v34_v2  ;;  %v36_v34 = vld [vmem:[%s278_s1] sm:$0xff]  ;;  %v100_v38 = vshrl.u32 %v99_v36, 7  ;;  %v104_v39 = vand.u32 127, %v99_v36 }
   0x7   :  { %v55_v3 = vsel %vm39_vm0, %v54_v1, 0.0  ;;  %v175_v41 = vld [vmem:[%s280_s3] ss:$0 sm:$0xff] }
   0x8   :  { %56 = vadd.xlane.f32.xlu0 %v55_v3  ;;  %v40_v5 = vsel %vm39_vm0, %v38_v4, 0.0  ;;  %vm105_vm8 = vcmp.eq.s32.totalorder %v100_v38, %v104_v39 }
   0x9   :  { %vm106_vm10 = vmxor %vm105_vm8, %vm214_vm9 }
  0x10   :  { %41 = vadd.xlane.f32.xlu0 %v40_v5 }
  0x7b   :  { %v57_v6 = vpop.xlane.xlu0 %56 }
  0x7c   :  { %v58_v7 = vmax.f32 %v57_v6, 1e-24 }
  0x7e   :  { %176 = vrsqrt.f32 %v58_v7  ;;  %vm65_vm2 = vweird.f32 %v58_v7 }
  0x83   :  { %v42_v8 = vpop.xlane.xlu0 %41 }
  0x84   :  { %v177_v9 = vpop.eup %176  ;;  %v43_v10 = vmax.f32 %v42_v8, 1e-24 }
  0x85   :  { %v60_v11 = vmul.f32 %v177_v9, %v58_v7  ;;  %vm66_vm1 = vweird.f32 %v177_v9 }
  0x86   :  { %178 = vrsqrt.f32 %v43_v10  ;;  %vm67_vm3 = vmor %vm65_vm2, %vm66_vm1  ;;  %vm50_vm5 = vweird.f32 %v43_v10 }
  0x87   :  { %v61_v12 = vmul.f32 %v177_v9, %v60_v11 }
  0x89   :  { %v62_v13 = vmul.f32 0.5, %v61_v12 }
  0x8b   :  { %v63_v14 = vsub.f32 1.5, %v62_v13 }
  0x8c   :  { %v179_v15 = vpop.eup %178 }
  0x8d   :  { %v45_v16 = vmul.f32 %v179_v15, %v43_v10  ;;  %v64_v17 = vmul.f32 %v177_v9, %v63_v14  ;;  %vm51_vm4 = vweird.f32 %v179_v15 }
  0x8e   :  { %vm52_vm6 = vmor %vm50_vm5, %vm51_vm4 }
  0x8f   :  { %v46_v18 = vmul.f32 %v179_v15, %v45_v16  ;;  %v68_v19 = vsel %vm67_vm3, %v177_v9, %v64_v17 }
  0x90   :  { %v71_v20 = vmul.f32 %v68_v19, %v35_v0 }
  0x91   :  { %v47_v21 = vmul.f32 0.5, %v46_v18 }
  0x92   :  { %v72_v22 = vpack.c.bf16 %v71_v20, %v71_v20 }
  0x93   :  { %v48_v23 = vsub.f32 1.5, %v47_v21 }
  0x94   :  { %v77_v24 = vsel %vm39_vm0, %v72_v22, 0 }
  0x95   :  { %86 = vmatpush.bf16.xpose.msra.mxu0 %v77_v24  ;;  %v49_v25 = vmul.f32 %v179_v15, %v48_v23 }
  0x97   :  { %v53_v26 = vsel %vm52_vm6, %v179_v15, %v49_v25 }
  0x98   :  { %v69_v27 = vmul.f32 %v53_v26, %v34_v2 }
  0x9a   :  { %v70_v28 = vpack.c.bf16 %v69_v27, %v69_v27 }
  0x9c   :  { %166 = vmatmul.msk.bf16.vlgmr.msra.gmra.mxu0 %vm39_vm0, %v70_v28 }
 0x119   :  { %v88_v30 = vpop.f32.mrf.mxu0 }
 0x11a   :  { %v92_v31 = vmul.f32 10.0, %v88_v30 }
 0x11c   :  { %v109_v32 = vsel %vm108_vm7, %v92_v31, -inf }
 0x11d   :  { %110 = vmax.xlane.f32.xlu1 %v109_v32 }
 0x121   :  { %v90_v33 = vpop.f32.mrf.mxu0 }
 0x136   :  { %94 = vperm.xlu1 %173, %v36_v34  }
 0x190   :  { %v111_v35 = vpop.xlane.xlu1 %110 }
 0x191   :  { %v112_v37 = vsub.f32 %v92_v31, %v111_v35 }
 0x193   :  { %v113_v40 = vmul.f32 1.442695, %v112_v37 }
 0x195   :  { %180 = vpow2.f32 %v113_v40 }
 0x19b   :  { %v181_v48 = vpop.eup %180 }
 0x19c   :  { %v115_v49 = vsel %vm105_vm8, 0.0, %v181_v48 }
 0x19d   :  { %v116_v50 = vsel %vm108_vm7, %v115_v49, 0.0 }
 0x1a8   :  { %v95_v42 = vpop.permute.xlu1 %94 }
 0x1a9   :  { %vm97_vm11 = vcmp.eq.s32.totalorder %v95_v42, %v175_v41 }
 0x1aa   :  { %vm107_vm12 = vmand %vm97_vm11, %vm106_vm10 }
 0x1ab   :  { %v126_v43 = vsel %vm107_vm12, %v112_v37, 0.0  ;;  %v167_v45 = vsel %vm107_vm12, 1.0, %v215_v44 }
 0x1ac   :  { %v127_v46 = vsel %vm108_vm7, %v126_v43, 0.0  ;;  %v123_v47 = vsel %vm108_vm7, %v167_v45, 0.0 }
 0x1ad   :  { %128 = vadd.xlane.f32.xlu0 %v127_v46  ;;  %124 = vadd.xlane.f32.xlu2 %v123_v47 }
 0x1b5   :  { %117 = vadd.xlane.f32.xlu2 %v116_v50 }
 0x220   :  { %v125_v51 = vpop.xlane.xlu2 %124  ;;  %v129_v2 = vpop.xlane.xlu0 %128 }
 0x221   :  { %vm132_vm14 = vcmp.gt.f32.partialorder %v125_v51, 0.0 }
 0x222   :  { %v133_v52 = vsel %vm132_vm14, %v125_v51, 1.0  ;;  %v168_v53 = vsel %vm132_vm14, 1.0, %v215_v44 }
 0x223   :  { %182 = vrcp.f32 %v133_v52  ;;  %156 = vst.msk [vmem:[%s282_s5] sm:$0xff] %vm152_vm13, %v168_v53  ;;  %v145_v60 = vand.u32 2147483648, %v133_v52  ;;  %vm139_vm0 = vweird.f32 %v133_v52  ;;  %v143_v62 = vand.u32 2147483647, %v133_v52 }
 0x225   :  { %v146_v3 = vor.u32 1.1754944e-38, %v145_v60  ;;  %vm144_vm2 = vcmp.eq.f32.partialorder %v143_v62, 8.507059e+37 }
 0x228   :  { %v118_v54 = vpop.xlane.xlu2 %117 }
 0x229   :  { %v183_v55 = vpop.eup %182  ;;  %184 = vlog2.f32 %v118_v54 }
 0x22a   :  { %v135_v56 = vmul.f32 %v183_v55, %v133_v52  ;;  %vm140_vm15 = vweird.f32 %v183_v55 }
 0x22b   :  { %vm141_vm1 = vmor %vm139_vm0, %vm140_vm15 }
 0x22c   :  { %v136_v57 = vsub.f32 1.0, %v135_v56 }
 0x22e   :  { %v137_v58 = vmul.f32 %v183_v55, %v136_v57 }
 0x22f   :  { %v185_v59 = vpop.eup %184 }
 0x230   :  { %v138_v61 = vadd.f32 %v183_v55, %v137_v58  ;;  %v120_v63 = vmul.f32 0.6931472, %v185_v59 }
 0x232   :  { %v142_v0 = vsel %vm141_vm1, %v183_v55, %v138_v61  ;;  %v130_v1 = vmul.f32 %v125_v51, %v120_v63 }
 0x233   :  { %v147_v5 = vsel %vm144_vm2, %v146_v3, %v142_v0 }
 0x234   :  { %v131_v4 = vsub.f32 %v129_v2, %v130_v1 }
 0x236   :  { %v148_v6 = vmul.f32 %v147_v5, %v131_v4 }
 0x238   :  { %v149_v7 = vsub.f32 0.0, %v148_v6 }
 0x23a   :  { %v150_v8 = vmul.f32 0.1, %v149_v7 }
 0x23c   :  { %v151_v9 = vsel %vm132_vm14, %v150_v8, 0.0 }
 0x23d   :  { %153 = vst.msk [vmem:[%s281_s4] sm:$0xff] %vm152_vm13, %v151_v9 }
 0x23e   :  { %165 = vsyncpa [#allocation3], 1 }

</bundles_post_ra>
